<compile_context>
chip_gen: v5e
topology: v5e:2x2
jax: 0.10.0
libtpu: 0.0.40
codegen_flags: <defaults>
</compile_context>

<pallas_src>
import jax
import jax.numpy as jnp
from jax.experimental import pallas as pl
from jax.experimental.pallas import tpu as pltpu


# ------------------------------ helpers -------------------------------------

def _round_up(x, m):
    return (x + m - 1) // m * m


def _pad2(x, rows, cols):
    return jnp.pad(x, ((0, rows - x.shape[0]), (0, cols - x.shape[1])))


def _doc_encode(token_ids, emb_table):
    """DocEncoder stand-in: embedding lookup + mean pool over seq_len.  (N, L) -> (N, D)."""
    emb = jnp.take(emb_table, token_ids, axis=0)   # (N, L, D)
    return emb.mean(axis=1)


# ------------------------------ forward -------------------------------------

def youtube_net_forward(params, click_history, candidates, labels,
                        discrete_features, real_value_features):
    B, Hh, L = click_history.shape
    _, C, _ = candidates.shape
    D = params["item_emb"].shape[1]

    # history encoding: (B*H, L) -> (B*H, D) -> (B, H, D) -> mean over history -> (B, D)
    enc_hist = _doc_encode(click_history.reshape(-1, L), params["item_emb"])
    enc_hist = enc_hist.reshape(B, Hh, D).mean(axis=1)
    # candidate encoding: (B, C, D)
    enc_cand = _doc_encode(candidates.reshape(-1, L), params["item_emb"]).reshape(B, C, D)

    feats = [enc_hist]
    for tbl, ids in zip(params["disc_tables"], discrete_features):
        feats.append(jnp.take(tbl, ids, axis=0))          # (B, disc_emb_dims)
    feats.append(real_value_features)                      # (B, num_real)
    features = jnp.concatenate(feats, axis=-1).astype(jnp.float32)   # (B, F)
    F = features.shape[1]

    H1, H2 = params["w1"].shape[1], params["w2"].shape[1]
    Fp, H1p, H2p = _round_up(F, 128), _round_up(H1, 128), _round_up(H2, 128)

    # batch tiling (pad batch to a multiple of the tile, mask padded rows in the loss)
    TB = min(256, _round_up(B, 8))
    B_pad = _round_up(B, TB)
    num_tiles = B_pad // TB

    # lane/sublane-friendly zero-padding; matmul operands to bf16 (f32 accumulation in-kernel)
    feat_p = jnp.pad(features, ((0, B_pad - B), (0, Fp - F))).astype(jnp.bfloat16)
    cand_p = jnp.pad(enc_cand, ((0, B_pad - B), (0, 0), (0, 0))).astype(jnp.bfloat16)
    lab_p = jnp.pad(labels.astype(jnp.float32), ((0, B_pad - B), (0, 0)))

    w1 = _pad2(params["w1"], Fp, H1p).astype(jnp.bfloat16)
    b1 = _pad2(params["b1"], 1, H1p)
    w2 = _pad2(params["w2"], H1p, H2p).astype(jnp.bfloat16)
    b2 = _pad2(params["b2"], 1, H2p)
    w3 = _pad2(params["w3"], H2p, D).astype(jnp.bfloat16)
    b3 = params["b3"]

    def fused_kernel(feat_ref, w1_ref, b1_ref, w2_ref, b2_ref, w3_ref, b3_ref,
                     cand_ref, lab_ref, part_ref):
        # ---- hidden_layers: Linear->ReLU x3 (bf16 MXU, f32 accumulation) ----
        x = feat_ref[...]                                                     # (TB, Fp) bf16
        h = jnp.dot(x, w1_ref[...], preferred_element_type=jnp.float32) + b1_ref[...]
        h = jnp.maximum(h, 0.0)
        h = jnp.dot(h.astype(jnp.bfloat16), w2_ref[...],
                    preferred_element_type=jnp.float32) + b2_ref[...]
        h = jnp.maximum(h, 0.0)
        h = jnp.dot(h.astype(jnp.bfloat16), w3_ref[...],
                    preferred_element_type=jnp.float32) + b3_ref[...]
        hidden = jnp.maximum(h, 0.0)                                          # (TB, D) f32

        # ---- candidate scoring on the MXU: logits[b,c] = hidden[b] . cand[b,c] ----
        cand = cand_ref[...]                                                  # (TB, C, D) bf16
        logits = jnp.einsum('bqd,bkd->bqk',
                            hidden.astype(jnp.bfloat16)[:, None, :], cand,
                            preferred_element_type=jnp.float32)[:, 0, :]      # (TB, C) f32

        # ---- sigmoid + BCELoss (clamped log terms, torch parity), f32 elementwise ----
        probas = jax.nn.sigmoid(logits)
        lbl = lab_ref[...]
        log_p = jnp.maximum(jnp.log(probas), -100.0)
        log_1mp = jnp.maximum(jnp.log(1.0 - probas), -100.0)
        bce = -(lbl * log_p + (1.0 - lbl) * log_1mp)

        # mask padded batch rows
        row = pl.program_id(0) * TB + jax.lax.broadcasted_iota(jnp.int32, (TB, C), 0)
        bce = jnp.where(row < B, bce, 0.0)
        psum = jnp.sum(bce)

        # lane-dense per-tile partial sum (full unmasked (8,128) store)
        part_ref[...] = jnp.full((1, 8, 128), psum, dtype=jnp.float32)

    cost = pl.CostEstimate(
        flops=2 * B_pad * (Fp * H1p + H1p * H2p + H2p * D + C * D),
        transcendentals=3 * B_pad * C,
        bytes_accessed=(feat_p.size * 2 + cand_p.size * 2 + lab_p.size * 4
                        + w1.size * 2 + w2.size * 2 + w3.size * 2
                        + b1.size * 4 + b2.size * 4 + b3.size * 4
                        + num_tiles * 8 * 128 * 4),
    )

    partials = pl.pallas_call(
        fused_kernel,
        out_shape=jax.ShapeDtypeStruct((num_tiles, 8, 128), jnp.float32),
        grid_spec=pltpu.PrefetchScalarGridSpec(
            num_scalar_prefetch=0,
            grid=(num_tiles,),
            in_specs=[
                pl.BlockSpec((TB, Fp), lambda i: (i, 0)),        # features  (batch-tiled)
                pl.BlockSpec((Fp, H1p), lambda i: (0, 0)),       # w1        (resident)
                pl.BlockSpec((1, H1p), lambda i: (0, 0)),        # b1
                pl.BlockSpec((H1p, H2p), lambda i: (0, 0)),      # w2
                pl.BlockSpec((1, H2p), lambda i: (0, 0)),        # b2
                pl.BlockSpec((H2p, D), lambda i: (0, 0)),        # w3
                pl.BlockSpec((1, D), lambda i: (0, 0)),          # b3
                pl.BlockSpec((TB, C, D), lambda i: (i, 0, 0)),   # enc_cand  (batch-tiled)
                pl.BlockSpec((TB, C), lambda i: (i, 0)),         # labels    (batch-tiled)
            ],
            out_specs=pl.BlockSpec((1, 8, 128), lambda i: (i, 0, 0)),
        ),
        compiler_params=pltpu.CompilerParams(
            dimension_semantics=("parallel",),          # megacore-shardable batch axis (v7x)
            vmem_limit_bytes=32 * 1024 * 1024,          # sized for v7x's 64 MiB physical VMEM
        ),
        cost_estimate=cost,
    )(feat_p, w1, b1, w2, b2, w3, b3, cand_p, lab_p)

    # finalize: mean over the B*C real (unmasked) elements
    loss = partials[:, 0, 0].sum() / (B * C)
    return loss


# ------------------------------ parameters ----------------------------------

def init_params(key, vocab_size, item_emb_dims, disc_vocab_sizes, disc_emb_dims, num_real):
    D = item_emb_dims
    F = D + len(disc_vocab_sizes) * disc_emb_dims + num_real
    h1, h2, h3 = 4 * D, 2 * D, D
    ks = jax.random.split(key, 8 + len(disc_vocab_sizes))
    params = {
        "item_emb": jax.random.normal(ks[0], (vocab_size, D), jnp.float32) * 0.05,
        "disc_tables": [
            jax.random.normal(ks[1 + i], (v, disc_emb_dims), jnp.float32) * 0.05
            for i, v in enumerate(disc_vocab_sizes)
        ],
        "w1": jax.random.normal(ks[-6], (F, h1), jnp.float32) * 0.05,
        "b1": jax.random.normal(ks[-5], (1, h1), jnp.float32) * 0.01,
        "w2": jax.random.normal(ks[-4], (h1, h2), jnp.float32) * 0.05,
        "b2": jax.random.normal(ks[-3], (1, h2), jnp.float32) * 0.01,
        "w3": jax.random.normal(ks[-2], (h2, h3), jnp.float32) * 0.05,
        "b3": jax.random.normal(ks[-1], (1, h3), jnp.float32) * 0.01,
    }
    return params


# --------------------------------- main --------------------------------------

if __name__ == "__main__":
    key = jax.random.PRNGKey(0)
    B, Hh, L, C = 2, 3, 8, 4          # batch, history_size, seq_len, num_candidates
    vocab_size = 100
    item_emb_dims = 32
    disc_vocab_sizes = (50, 30)
    disc_emb_dims = 20
    num_real = 4

    k_par, k_hist, k_cand, k_lab, k_d1, k_d2, k_real = jax.random.split(key, 7)
    params = init_params(k_par, vocab_size, item_emb_dims,
                         disc_vocab_sizes, disc_emb_dims, num_real)

    click_history = jax.random.randint(k_hist, (B, Hh, L), 0, vocab_size, jnp.int32)
    candidates = jax.random.randint(k_cand, (B, C, L), 0, vocab_size, jnp.int32)
    labels = jax.random.bernoulli(k_lab, 0.5, (B, C)).astype(jnp.float32)
    discrete_features = [
        jax.random.randint(k_d1, (B,), 0, disc_vocab_sizes[0], jnp.int32),
        jax.random.randint(k_d2, (B,), 0, disc_vocab_sizes[1], jnp.int32),
    ]
    real_value_features = jax.random.normal(k_real, (B, num_real), jnp.float32)

    loss = jax.jit(youtube_net_forward)(
        params, click_history, candidates, labels,
        discrete_features, real_value_features)
    jax.block_until_ready(loss)
    print("KERNEL_OK")
</pallas_src>

<mosaic_0001>
module attributes {stable_mosaic.version = 11 : i64} {
  func.func @fused_kernel(%arg0: i32, %arg1: memref<8x128xbf16, #tpu.memory_space<vmem>>, %arg2: memref<128x128xbf16, #tpu.memory_space<vmem>>, %arg3: memref<1x128xf32, #tpu.memory_space<vmem>>, %arg4: memref<128x128xbf16, #tpu.memory_space<vmem>>, %arg5: memref<1x128xf32, #tpu.memory_space<vmem>>, %arg6: memref<128x32xbf16, #tpu.memory_space<vmem>>, %arg7: memref<1x32xf32, #tpu.memory_space<vmem>>, %arg8: memref<8x4x32xbf16, #tpu.memory_space<vmem>>, %arg9: memref<8x4xf32, #tpu.memory_space<vmem>>, %arg10: memref<1x8x128xf32, #tpu.memory_space<vmem>>) attributes {dimension_semantics = [#tpu.dimension_semantics<parallel>], iteration_bounds = array<i64: 1>, scalar_prefetch = 0 : i64, scratch_operands = 0 : i64, tpu.core_type = #tpu.core_type<tc>, window_params = [{transform_indices = @transform_0, window_bounds = array<i64: 8, 128>}, {pipeline_mode = #tpu.pipeline_mode<synchronous>, transform_indices = @transform_1, window_bounds = array<i64: 128, 128>}, {pipeline_mode = #tpu.pipeline_mode<synchronous>, transform_indices = @transform_2, window_bounds = array<i64: 1, 128>}, {pipeline_mode = #tpu.pipeline_mode<synchronous>, transform_indices = @transform_3, window_bounds = array<i64: 128, 128>}, {pipeline_mode = #tpu.pipeline_mode<synchronous>, transform_indices = @transform_4, window_bounds = array<i64: 1, 128>}, {pipeline_mode = #tpu.pipeline_mode<synchronous>, transform_indices = @transform_5, window_bounds = array<i64: 128, 32>}, {pipeline_mode = #tpu.pipeline_mode<synchronous>, transform_indices = @transform_6, window_bounds = array<i64: 1, 32>}, {transform_indices = @transform_7, window_bounds = array<i64: 8, 4, 32>}, {transform_indices = @transform_8, window_bounds = array<i64: 8, 4>}, {transform_indices = @transform_9, window_bounds = array<i64: 1, 8, 128>}]} {
    %c0 = arith.constant 0 : index
    %c0_0 = arith.constant 0 : index
    %0 = vector.load %arg1[%c0, %c0_0] : memref<8x128xbf16, #tpu.memory_space<vmem>>, vector<8x128xbf16>
    %c0_1 = arith.constant 0 : index
    %c0_2 = arith.constant 0 : index
    %1 = vector.load %arg2[%c0_1, %c0_2] : memref<128x128xbf16, #tpu.memory_space<vmem>>, vector<128x128xbf16>
    %cst = arith.constant dense<0.000000e+00> : vector<8x128xf32>
    %2 = tpu.matmul %0, %1, %cst {dimension_numbers = #tpu.dot_dimension_numbers<[1], [0], [0], [1], [0, 0, 1, 1], [], []>} : vector<8x128xbf16>, vector<128x128xbf16>, vector<8x128xf32> -> vector<8x128xf32>
    %c0_3 = arith.constant 0 : index
    %c0_4 = arith.constant 0 : index
    %3 = vector.load %arg3[%c0_3, %c0_4] : memref<1x128xf32, #tpu.memory_space<vmem>>, vector<1x128xf32>
    %4 = vector.broadcast %3 : vector<1x128xf32> to vector<8x128xf32>
    %5 = arith.addf %2, %4 : vector<8x128xf32>
    %cst_5 = arith.constant 0.000000e+00 : f32
    %6 = vector.broadcast %cst_5 : f32 to vector<8x128xf32>
    %7 = arith.maximumf %5, %6 : vector<8x128xf32>
    %8 = arith.truncf %7 : vector<8x128xf32> to vector<8x128xbf16>
    %c0_6 = arith.constant 0 : index
    %c0_7 = arith.constant 0 : index
    %9 = vector.load %arg4[%c0_6, %c0_7] : memref<128x128xbf16, #tpu.memory_space<vmem>>, vector<128x128xbf16>
    %cst_8 = arith.constant dense<0.000000e+00> : vector<8x128xf32>
    %10 = tpu.matmul %8, %9, %cst_8 {dimension_numbers = #tpu.dot_dimension_numbers<[1], [0], [0], [1], [0, 0, 1, 1], [], []>} : vector<8x128xbf16>, vector<128x128xbf16>, vector<8x128xf32> -> vector<8x128xf32>
    %c0_9 = arith.constant 0 : index
    %c0_10 = arith.constant 0 : index
    %11 = vector.load %arg5[%c0_9, %c0_10] : memref<1x128xf32, #tpu.memory_space<vmem>>, vector<1x128xf32>
    %12 = vector.broadcast %11 : vector<1x128xf32> to vector<8x128xf32>
    %13 = arith.addf %10, %12 : vector<8x128xf32>
    %cst_11 = arith.constant 0.000000e+00 : f32
    %14 = vector.broadcast %cst_11 : f32 to vector<8x128xf32>
    %15 = arith.maximumf %13, %14 : vector<8x128xf32>
    %16 = arith.truncf %15 : vector<8x128xf32> to vector<8x128xbf16>
    %c0_12 = arith.constant 0 : index
    %c0_13 = arith.constant 0 : index
    %17 = vector.load %arg6[%c0_12, %c0_13] : memref<128x32xbf16, #tpu.memory_space<vmem>>, vector<128x32xbf16>
    %cst_14 = arith.constant dense<0.000000e+00> : vector<8x32xf32>
    %18 = tpu.matmul %16, %17, %cst_14 {dimension_numbers = #tpu.dot_dimension_numbers<[1], [0], [0], [1], [0, 0, 1, 1], [], []>} : vector<8x128xbf16>, vector<128x32xbf16>, vector<8x32xf32> -> vector<8x32xf32>
    %c0_15 = arith.constant 0 : index
    %c0_16 = arith.constant 0 : index
    %19 = vector.load %arg7[%c0_15, %c0_16] : memref<1x32xf32, #tpu.memory_space<vmem>>, vector<1x32xf32>
    %20 = vector.broadcast %19 : vector<1x32xf32> to vector<8x32xf32>
    %21 = arith.addf %18, %20 : vector<8x32xf32>
    %cst_17 = arith.constant 0.000000e+00 : f32
    %22 = vector.broadcast %cst_17 : f32 to vector<8x32xf32>
    %23 = arith.maximumf %21, %22 : vector<8x32xf32>
    %c0_18 = arith.constant 0 : index
    %c0_19 = arith.constant 0 : index
    %c0_20 = arith.constant 0 : index
    %24 = vector.load %arg8[%c0_18, %c0_19, %c0_20] : memref<8x4x32xbf16, #tpu.memory_space<vmem>>, vector<8x4x32xbf16>
    %25 = arith.truncf %23 : vector<8x32xf32> to vector<8x32xbf16>
    %26 = vector.shape_cast %25 : vector<8x32xbf16> to vector<8x1x32xbf16>
    "tpu.trace_start"() <{level = 10 : i32, message = "bqd,bkd->bqk"}> : () -> ()
    %cst_21 = arith.constant dense<0.000000e+00> : vector<8x1x4xf32>
    %27 = tpu.matmul %26, %24, %cst_21 {dimension_numbers = #tpu.dot_dimension_numbers<[2], [2], [1], [1], [0, 0, 0, 1, 1, 1], [0], [0]>} : vector<8x1x32xbf16>, vector<8x4x32xbf16>, vector<8x1x4xf32> -> vector<8x1x4xf32>
    "tpu.trace_stop"() : () -> ()
    %28 = vector.shape_cast %27 : vector<8x1x4xf32> to vector<8x4xf32>
    %29 = arith.negf %28 : vector<8x4xf32>
    %30 = math.exp %29 : vector<8x4xf32>
    %cst_22 = arith.constant 1.000000e+00 : f32
    %31 = vector.broadcast %cst_22 : f32 to vector<8x4xf32>
    %32 = arith.addf %31, %30 : vector<8x4xf32>
    %33 = arith.divf %31, %32 : vector<8x4xf32>
    %c0_23 = arith.constant 0 : index
    %c0_24 = arith.constant 0 : index
    %34 = vector.load %arg9[%c0_23, %c0_24] : memref<8x4xf32, #tpu.memory_space<vmem>>, vector<8x4xf32>
    %35 = math.log %33 : vector<8x4xf32>
    %cst_25 = arith.constant -1.000000e+02 : f32
    %36 = vector.broadcast %cst_25 : f32 to vector<8x4xf32>
    %37 = arith.maximumf %35, %36 : vector<8x4xf32>
    %cst_26 = arith.constant 1.000000e+00 : f32
    %38 = vector.broadcast %cst_26 : f32 to vector<8x4xf32>
    %39 = arith.subf %38, %33 : vector<8x4xf32>
    %40 = math.log %39 : vector<8x4xf32>
    %cst_27 = arith.constant -1.000000e+02 : f32
    %41 = vector.broadcast %cst_27 : f32 to vector<8x4xf32>
    %42 = arith.maximumf %40, %41 : vector<8x4xf32>
    %43 = arith.mulf %34, %37 : vector<8x4xf32>
    %cst_28 = arith.constant 1.000000e+00 : f32
    %44 = vector.broadcast %cst_28 : f32 to vector<8x4xf32>
    %45 = arith.subf %44, %34 : vector<8x4xf32>
    %46 = arith.mulf %45, %42 : vector<8x4xf32>
    %47 = arith.addf %43, %46 : vector<8x4xf32>
    %cst_29 = arith.constant 0.000000e+00 : f32
    %48 = vector.broadcast %cst_29 : f32 to vector<8x4xf32>
    %49 = arith.subf %48, %47 : vector<8x4xf32>
    %c8_i32 = arith.constant 8 : i32
    %50 = arith.muli %arg0, %c8_i32 : i32
    %51 = tpu.iota {dimensions = array<i32: 0>} : vector<8x4xi32>
    %52 = vector.broadcast %50 : i32 to vector<8x4xi32>
    %53 = arith.addi %52, %51 : vector<8x4xi32>
    %c2_i32 = arith.constant 2 : i32
    %54 = vector.broadcast %c2_i32 : i32 to vector<8x4xi32>
    %55 = arith.cmpi slt, %53, %54 : vector<8x4xi32>
    %cst_30 = arith.constant 0.000000e+00 : f32
    %56 = vector.broadcast %cst_30 : f32 to vector<8x4xf32>
    %57 = arith.select %55, %49, %56 : vector<8x4xi1>, vector<8x4xf32>
    %58 = vector.shape_cast %57 : vector<8x4xf32> to vector<1x8x4xf32>
    %cst_31 = arith.constant dense<0.000000e+00> : vector<1xf32>
    %59 = vector.multi_reduction <add>, %58, %cst_31 [1, 2] : vector<1x8x4xf32> to vector<1xf32>
    %60 = vector.shape_cast %59 : vector<1xf32> to vector<1x1x1xf32>
    %61 = vector.extract %60[0, 0, 0] : f32 from vector<1x1x1xf32>
    %62 = vector.broadcast %61 : f32 to vector<1x8x128xf32>
    %c0_32 = arith.constant 0 : index
    %c0_33 = arith.constant 0 : index
    %c0_34 = arith.constant 0 : index
    %63 = vector.load %arg10[%c0_32, %c0_33, %c0_34] : memref<1x8x128xf32, #tpu.memory_space<vmem>>, vector<1x8x128xf32>
    tpu.vector_store %arg10[%c0_32, %c0_33, %c0_34], %62 {strides = array<i32>} : memref<1x8x128xf32, #tpu.memory_space<vmem>>, vector<1x8x128xf32>,
    return
  }
  func.func @transform_0(%arg0: i32) -> (i32, i32) {
    %c0_i32 = arith.constant 0 : i32
    %c0_i32_0 = arith.constant 0 : i32
    return %arg0, %c0_i32 : i32, i32
  }
  func.func @transform_1(%arg0: i32) -> (i32, i32) {
    %c0_i32 = arith.constant 0 : i32
    %c0_i32_0 = arith.constant 0 : i32
    %c0_i32_1 = arith.constant 0 : i32
    return %c0_i32, %c0_i32_0 : i32, i32
  }
  func.func @transform_2(%arg0: i32) -> (i32, i32) {
    %c0_i32 = arith.constant 0 : i32
    %c0_i32_0 = arith.constant 0 : i32
    %c0_i32_1 = arith.constant 0 : i32
    return %c0_i32, %c0_i32_0 : i32, i32
  }
  func.func @transform_3(%arg0: i32) -> (i32, i32) {
    %c0_i32 = arith.constant 0 : i32
    %c0_i32_0 = arith.constant 0 : i32
    %c0_i32_1 = arith.constant 0 : i32
    return %c0_i32, %c0_i32_0 : i32, i32
  }
  func.func @transform_4(%arg0: i32) -> (i32, i32) {
    %c0_i32 = arith.constant 0 : i32
    %c0_i32_0 = arith.constant 0 : i32
    %c0_i32_1 = arith.constant 0 : i32
    return %c0_i32, %c0_i32_0 : i32, i32
  }
  func.func @transform_5(%arg0: i32) -> (i32, i32) {
    %c0_i32 = arith.constant 0 : i32
    %c0_i32_0 = arith.constant 0 : i32
    %c0_i32_1 = arith.constant 0 : i32
    return %c0_i32, %c0_i32_0 : i32, i32
  }
  func.func @transform_6(%arg0: i32) -> (i32, i32) {
    %c0_i32 = arith.constant 0 : i32
    %c0_i32_0 = arith.constant 0 : i32
    %c0_i32_1 = arith.constant 0 : i32
    return %c0_i32, %c0_i32_0 : i32, i32
  }
  func.func @transform_7(%arg0: i32) -> (i32, i32, i32) {
    %c0_i32 = arith.constant 0 : i32
    %c0_i32_0 = arith.constant 0 : i32
    %c0_i32_1 = arith.constant 0 : i32
    return %arg0, %c0_i32, %c0_i32_0 : i32, i32, i32
  }
  func.func @transform_8(%arg0: i32) -> (i32, i32) {
    %c0_i32 = arith.constant 0 : i32
    %c0_i32_0 = arith.constant 0 : i32
    return %arg0, %c0_i32 : i32, i32
  }
  func.func @transform_9(%arg0: i32) -> (i32, i32, i32) {
    %c0_i32 = arith.constant 0 : i32
    %c0_i32_0 = arith.constant 0 : i32
    %c0_i32_1 = arith.constant 0 : i32
    return %arg0, %c0_i32, %c0_i32_0 : i32, i32, i32
  }
}

</mosaic_0001>

<bundles_post_ra>
// kernel: youtube_net_forward.1
= control target key start
LH: loop header
LB: loop body
LE: loop exit
PB: predicated region body
PF: predicated region fallthrough
CT: control target
= control target key end

     0   :  { %vm320_vm0 = vcmask 261120   ;;  %vm293_vm1 = vcmask 1040384   ;;  %vm302_vm2 = vcmask 1042434   ;;  %vm298_vm3 = vcmask 1041409   ;;  %s1348_s1 = inlined_call_operand.vmem [shape: bf16[128,128], index: 1, kind: input, shape index: {}]   ;;  %s1349_s3 = inlined_call_operand.vmem [shape: bf16[128,128], index: 3, kind: input, shape index: {}]   ;;  %s1350_s2 = inlined_call_operand.vmem [shape: f32[1,128], index: 2, kind: input, shape index: {}]   ;;  %s1351_s0 = inlined_call_operand.vmem [shape: bf16[8,128], index: 0, kind: input, shape index: {}]   ;;  %s1352_s4 = inlined_call_operand.vmem [shape: f32[1,128], index: 4, kind: input, shape index: {}]   ;;  %s1353_s5 = inlined_call_operand.vmem [shape: bf16[128,32], index: 5, kind: input, shape index: {}]   ;;  %s1354_s6 = inlined_call_operand.vmem [shape: f32[1,32], index: 6, kind: input, shape index: {}]   ;;  %s1355_s7 = inlined_call_operand.vmem [shape: bf16[8,4,32], index: 7, kind: input, shape index: {}]   ;;  %s1356_s8 = inlined_call_operand.vmem [shape: f32[8,4], index: 8, kind: input, shape index: {}]   ;;  %s1357_s9 = inlined_call_operand.vmem [shape: f32[1,8,128], index: 9, kind: output, shape index: {}]  }
   0x1   :  { %v898_v0 = vld [vmem:[%s1348_s1 + $0x38] sm:$0xff]  ;;  %v897_v1 = vld [vmem:[%s1348_s1 + $0x30] sm:$0xff]  ;;  %v896_v4 = vld [vmem:[%s1348_s1 + $0x28] sm:$0xff]  ;;  %vm306_vm4 = vcmask 1043459  }
   0x2   :  { %102 = vmatpush.bf16.msra.mxu0 %v898_v0  ;;  %v906_v2 = vld [vmem:[%s1349_s3 + $0x38] sm:$0xff]  ;;  %v905_v3 = vld [vmem:[%s1349_s3 + $0x30] sm:$0xff]  ;;  %v904_v5 = vld [vmem:[%s1349_s3 + $0x28] sm:$0xff] }
   0x3   :  { %185 = vmatpush.bf16.msra.mxu1 %v906_v2  ;;  %v895_v6 = vld [vmem:[%s1348_s1 + $0x20] sm:$0xff]  ;;  %v894_v8 = vld [vmem:[%s1348_s1 + $0x18] sm:$0xff]  ;;  %v893_v10 = vld [vmem:[%s1348_s1 + $0x10] sm:$0xff] }
   0x4   :  { %v903_v7 = vld [vmem:[%s1349_s3 + $0x20] sm:$0xff]  ;;  %v902_v9 = vld [vmem:[%s1349_s3 + $0x18] sm:$0xff]  ;;  %v901_v11 = vld [vmem:[%s1349_s3 + $0x10] sm:$0xff] }
   0x5   :  { %v892_v12 = vld [vmem:[%s1348_s1 + $0x8] sm:$0xff]  ;;  %v891_v13 = vld [vmem:[%s1348_s1] sm:$0xff]  ;;  %v914_v17 = vld [vmem:[%s1353_s5 + $0x38] sm:$0xff] }
   0x6   :  { %103 = vmatpush.bf16.msra.mxu0 %v897_v1  ;;  %v33_v14 = vld [vmem:[%s1351_s0] sm:$0xf]  ;;  %v900_v15 = vld [vmem:[%s1349_s3 + $0x8] sm:$0xff]  ;;  %268 = vmatpush.bf16.msra.mxu2 %v914_v17  ;;  %v913_v18 = vld [vmem:[%s1353_s5 + $0x30] sm:$0xff] }
   0x7   :  { %186 = vmatpush.bf16.msra.mxu1 %v905_v3  ;;  %v899_v16 = vld [vmem:[%s1349_s3] sm:$0xff]  ;;  %v912_v19 = vld [vmem:[%s1353_s5 + $0x28] sm:$0xff]  ;;  %v910_v21 = vld [vmem:[%s1353_s5 + $0x18] sm:$0xff] }
   0x8   :  { %v911_v20 = vld [vmem:[%s1353_s5 + $0x20] sm:$0xff]  ;;  %v909_v22 = vld [vmem:[%s1353_s5 + $0x10] sm:$0xff]  ;;  %v908_v29 = vld [vmem:[%s1353_s5 + $0x8] sm:$0xff] }
   0x9   :  { %v917_v23 = vld [vmem:[%s1350_s2] ss:$0 sm:$0xff]  ;;  %v286_v39 = vld [vmem:[%s1355_s7 + $0x8] sm:$0x3]  ;;  %v285_v41 = vld [vmem:[%s1355_s7 + $0x6] sm:$0x3] }
   0xa   :  { %104 = vmatpush.bf16.msra.mxu0 %v896_v4  ;;  %269 = vmatpush.bf16.msra.mxu2 %v913_v18  ;;  %v907_v30 = vld [vmem:[%s1353_s5] sm:$0xff]  ;;  %v409_v40 = vsel %vm320_vm0, %v286_v39, 0  ;;  %v287_v42 = vld [vmem:[%s1355_s7 + $0xa] sm:$0x3]  ;;  %v388_v43 = vsel %vm320_vm0, %v285_v41, 0 }
   0xb   :  { %187 = vmatpush.bf16.msra.mxu1 %v904_v5  ;;  %v918_v31 = vld [vmem:[%s1352_s4] ss:$0 sm:$0xff]  ;;  %v430_v44 = vsel %vm320_vm0, %v287_v42, 0  ;;  %v283_v45 = vld [vmem:[%s1355_s7 + $0x2] sm:$0x3] }
   0xc   :  { %v282_v37 = vld [vmem:[%s1355_s7] sm:$0x3]  ;;  %v346_v46 = vsel %vm320_vm0, %v283_v45, 0  ;;  %v289_v47 = vld [vmem:[%s1355_s7 + $0xe] sm:$0x3] }
   0xd   :  { %v325_v38 = vsel %vm320_vm0, %v282_v37, 0  ;;  %v472_v48 = vsel %vm320_vm0, %v289_v47, 0  ;;  %v919_v49 = vld [vmem:[%s1354_s6] ss:$0 sm:$0xff]  ;;  %v284_v59 = vld [vmem:[%s1355_s7 + $0x4] sm:$0x3] }
   0xe   :  { %105 = vmatpush.bf16.msra.mxu0 %v895_v6  ;;  %270 = vmatpush.bf16.msra.mxu2 %v912_v19  ;;  %v367_v2 = vsel %vm320_vm0, %v284_v59, 0 }
   0xf   :  { %188 = vmatpush.bf16.msra.mxu1 %v903_v7  ;;  %334 = vmatpush.bf16.xpose.msra.mxu3 %v325_v38 }
  0x12   :  { %106 = vmatpush.bf16.msra.mxu0 %v894_v8  ;;  %271 = vmatpush.bf16.msra.mxu2 %v911_v20 }
  0x13   :  { %189 = vmatpush.bf16.msra.mxu1 %v902_v9 }
  0x16   :  { %107 = vmatpush.bf16.msra.mxu0 %v893_v10  ;;  %272 = vmatpush.bf16.msra.mxu2 %v910_v21 }
  0x17   :  { %190 = vmatpush.bf16.msra.mxu1 %v901_v11  ;;  %355 = vmatpush.bf16.xpose.msrb.mxu3 %v346_v46 }
  0x1a   :  { %108 = vmatpush.bf16.msra.mxu0 %v892_v12  ;;  %273 = vmatpush.bf16.msra.mxu2 %v909_v22 }
  0x1b   :  { %191 = vmatpush.bf16.msra.mxu1 %v900_v15 }
  0x1e   :  { %109 = vmatpush.bf16.msra.mxu0 %v891_v13  ;;  %274 = vmatpush.bf16.msra.mxu2 %v908_v29 }
  0x1f   :  { %192 = vmatpush.bf16.msra.mxu1 %v899_v16 }
  0x21   :  { %110 = vmatmul.bf16.vlgmr.msra.gmra.mxu0 %v33_v14  ;;  %v288_v14 = vld [vmem:[%s1355_s7 + $0xc] sm:$0x3] }
  0x22   :  { %275 = vmatpush.bf16.msra.mxu2 %v907_v30  ;;  %397 = vmatpush.bf16.xpose.msrb.mxu0 %v388_v43  ;;  %v451_v17 = vsel %vm320_vm0, %v288_v14, 0 }
  0x23   :  { %418 = vmatpush.bf16.xpose.msrb.mxu1 %v409_v40 }
  0x26   :  { %439 = vmatpush.bf16.xpose.msrb.mxu2 %v430_v44 }
  0x2a   :  { %481 = vmatpush.bf16.xpose.msra.mxu0 %v472_v48 }
  0x9e   :  { %v111_v24 = vpop.f32.mrf.mxu0 }
  0x9f   :  { %v112_v25 = vadd.f32 %v917_v23, %v111_v24 }
  0xa1   :  { %v115_v26 = vmax.f32 %v112_v25, 0.0 }
  0xa3   :  { %v116_v27 = vpack.c.bf16 %v115_v26, %v115_v26 }
  0xa5   :  { %193 = vmatmul.bf16.vlgmr.msra.gmra.mxu1 %v116_v27 }
  0xa6   :  { %v113_v28 = vpop.f32.mrf.mxu0 }
 0x122   :  { %v194_v32 = vpop.f32.mrf.mxu1 }
 0x123   :  { %v195_v33 = vadd.f32 %v918_v31, %v194_v32 }
 0x125   :  { %v198_v34 = vmax.f32 %v195_v33, 0.0 }
 0x127   :  { %v199_v35 = vpack.c.bf16 %v198_v34, %v198_v34 }
 0x129   :  { %276 = vmatmul.bf16.vlgmr.msra.gmra.mxu2 %v199_v35 }
 0x12a   :  { %v196_v36 = vpop.f32.mrf.mxu1 }
 0x1ac   :  { %v277_v50 = vpop.f32.mrf.mxu2 }
 0x1ad   :  { %v278_v51 = vadd.f32 %v919_v49, %v277_v50 }
 0x1af   :  { %v281_v52 = vmax.f32 %v278_v51, 0.0 }
 0x1b1   :  { %v290_v53 = vpack.c.bf16 %v281_v52, %v281_v52 }
 0x1b3   :  { %v292_v54 = vrot.slane %v290_v53, 3 }
 0x1b4   :  { %v279_v55 = vpop.f32.mrf.mxu2 }
 0x1b5   :  { %v296_v56 = vsel %vm293_vm1, %v290_v53, %v292_v54  ;;  %v303_v57 = vsel %vm302_vm2, %v290_v53, %v292_v54  ;;  %v299_v58 = vsel %vm298_vm3, %v290_v53, %v292_v54  ;;  %v307_v9 = vsel %vm306_vm4, %v290_v53, %v292_v54 }
 0x1b6   :  { %v871_v60 = vpack.i.b16 %v296_v56, %v296_v56  ;;  %v305_v61 = vrot.slane %v303_v57, 2  ;;  %v301_v62 = vrot.slane %v299_v58, 1  ;;  %v311_v10 = vunpack.i.h.s16 %v296_v56 }
 0x1b7   :  { %v309_v11 = vrot.slane %v307_v9, 3 }
 0x1b8   :  { %v319_v63 = vperm.slane %v871_v60, 0  ;;  %v877_v0 = vpack.i.b16 %v305_v61, %v305_v61  ;;  %v313_v1 = vunpack.i.h.s16 %v301_v62  ;;  %v315_v3 = vunpack.i.h.s16 %v305_v61 }
 0x1b9   :  { %v340_v12 = vpack.i.b16 %v311_v10, %v311_v10  ;;  %v317_v13 = vunpack.i.h.s16 %v309_v11  ;;  %v874_v19 = vpack.i.b16 %v301_v62, %v301_v62  ;;  %v880_v21 = vpack.i.b16 %v309_v11, %v309_v11 }
 0x1ba   :  { %872 = vmatmul.msk.bf16.vlgmr.msra.gmra.mxu3 %vm320_vm0, %v319_v63  ;;  %v404_v4 = vperm.slane %v877_v0, 0  ;;  %v382_v5 = vpack.i.b16 %v313_v1, %v313_v1  ;;  %v424_v6 = vpack.i.b16 %v315_v3, %v315_v3 }
 0x1bb   :  { %376 = vmatpush.bf16.xpose.msra.mxu3 %v367_v2  ;;  %v341_v15 = vperm.slane %v340_v12, 0  ;;  %v466_v16 = vpack.i.b16 %v317_v13, %v317_v13  ;;  %v362_v20 = vperm.slane %v874_v19, 0  ;;  %v446_v22 = vperm.slane %v880_v21, 0 }
 0x1bc   :  { %878 = vmatmul.msk.bf16.vlgmr.msrb.gmra.mxu1 %vm320_vm0, %v404_v4  ;;  %v383_v7 = vperm.slane %v382_v5, 0  ;;  %v425_v8 = vperm.slane %v424_v6, 0 }
 0x1bd   :  { %v467_v18 = vperm.slane %v466_v16, 0 }
 0x1be   :  { %876 = vmatmul.msk.bf16.vlgmr.msrb.gmra.mxu0 %vm320_vm0, %v383_v7  ;;  %879 = vmatmul.msk.bf16.vlgmr.msrb.gmra.mxu2 %vm320_vm0, %v425_v8 }
 0x1ca   :  { %873 = vmatmul.msk.bf16.vlgmr.msrb.gmra.mxu3 %vm320_vm0, %v341_v15 }
 0x1cb   :  { %460 = vmatpush.bf16.xpose.msrb.mxu3 %v451_v17 }
 0x1ce   :  { %882 = vmatmul.msk.bf16.vlgmr.msra.gmra.mxu0 %vm320_vm0, %v467_v18 }
 0x1da   :  { %875 = vmatmul.msk.bf16.vlgmr.msra.gmra.mxu3 %vm320_vm0, %v362_v20 }
 0x1ea   :  { %881 = vmatmul.msk.bf16.vlgmr.msrb.gmra.mxu3 %vm320_vm0, %v446_v22 }
 0x239   :  { %v420_v23 = vpop.f32.mrf.mxu1 }
 0x23a   :  { %v887_v30 = vmul.f32 -1.442695, %v420_v23 }
 0x23b   :  { %v399_v24 = vpop.f32.mrf.mxu0 }
 0x23c   :  { %v886_v32 = vmul.f32 -1.442695, %v399_v24  ;;  %920 = vpow2.f32 %v887_v30 }
 0x23d   :  { %v336_v25 = vpop.f32.mrf.mxu3 }
 0x23e   :  { %v883_v34 = vmul.f32 -1.442695, %v336_v25  ;;  %922 = vpow2.f32 %v886_v32 }
 0x240   :  { %924 = vpow2.f32 %v883_v34 }
 0x241   :  { %v422_v26 = vpop.f32.mrf.mxu1  ;;  %v441_v27 = vpop.f32.mrf.mxu2 }
 0x242   :  { %v888_v37 = vmul.f32 -1.442695, %v441_v27  ;;  %v921_v39 = vpop.eup %920 }
 0x243   :  { %v401_v28 = vpop.f32.mrf.mxu0  ;;  %v1161_v44 = vadd.f32 1.0, %v921_v39 }
 0x244   :  { %v923_v40 = vpop.eup %922 }
 0x245   :  { %v338_v29 = vpop.f32.mrf.mxu3  ;;  %v1163_v46 = vadd.f32 1.0, %v923_v40  ;;  %v590_v63 = vand.u32 2147483648, %v1161_v44  ;;  %v588_v7 = vand.u32 2147483647, %v1161_v44  ;;  %vm584_vm5 = vweird.f32 %v1161_v44 }
 0x246   :  { %v925_v43 = vpop.eup %924 }
 0x247   :  { %v1165_v47 = vadd.f32 1.0, %v925_v43  ;;  %v1199_v8 = vor.u32 1.1754944e-38, %v590_v63  ;;  %v575_v10 = vand.u32 2147483648, %v1163_v46  ;;  %vm569_vm7 = vweird.f32 %v1163_v46 }
 0x248   :  { %v573_v15 = vand.u32 2147483647, %v1163_v46  ;;  %vm1233_vm13 = vcmp.eq.f32.partialorder %v588_v7, 8.507059e+37 }
 0x249   :  { %v443_v31 = vpop.f32.mrf.mxu2  ;;  %v530_v16 = vand.u32 2147483648, %v1165_v47  ;;  %v528_v19 = vand.u32 2147483647, %v1165_v47  ;;  %v576_v23 = vor.u32 1.1754944e-38, %v575_v10  ;;  %vm524_vm9 = vweird.f32 %v1165_v47 }
 0x24a   :  { %vm1227_vm12 = vcmp.eq.f32.partialorder %v573_v15, 8.507059e+37 }
 0x24b   :  { %v483_v33 = vpop.f32.mrf.mxu0  ;;  %v531_v32 = vor.u32 1.1754944e-38, %v530_v16  ;;  %vm1238_vm15 = vcmp.eq.f32.partialorder %v528_v19, 8.507059e+37 }
 0x24c   :  { %v890_v41 = vmul.f32 -1.442695, %v483_v33 }
 0x24d   :  { %v357_v35 = vpop.f32.mrf.mxu3 }
 0x24e   :  { %v884_v36 = vmul.f32 -1.442695, %v357_v35 }
 0x250   :  { %926 = vpow2.f32 %v884_v36 }
 0x251   :  { %928 = vpow2.f32 %v888_v37 }
 0x252   :  { %930 = vpow2.f32 %v890_v41 }
 0x253   :  { %v485_v38 = vpop.f32.mrf.mxu0  ;;  %932 = vrcp.f32 %v1161_v44 }
 0x254   :  { %934 = vrcp.f32 %v1163_v46 }
 0x255   :  { %v359_v42 = vpop.f32.mrf.mxu3 }
 0x256   :  { %v927_v45 = vpop.eup %926 }
 0x257   :  { %v929_v48 = vpop.eup %928  ;;  %v1168_v49 = vadd.f32 1.0, %v927_v45 }
 0x258   :  { %v1173_v51 = vadd.f32 1.0, %v929_v48  ;;  %v931_v53 = vpop.eup %930 }
 0x259   :  { %936 = vrcp.f32 %v1168_v49  ;;  %v1175_v54 = vpop.eup %932  ;;  %v1180_v56 = vadd.f32 1.0, %v931_v53  ;;  %v545_v17 = vand.u32 2147483648, %v1168_v49  ;;  %vm539_vm8 = vweird.f32 %v1168_v49 }
 0x25a   :  { %938 = vrcp.f32 %v1165_v47  ;;  %v1177_v55 = vpop.eup %934  ;;  %v580_v60 = vmul.f32 %v1175_v54, %v1161_v44  ;;  %v543_v20 = vand.u32 2147483647, %v1168_v49  ;;  %vm585_vm11 = vweird.f32 %v1175_v54 }
 0x25b   :  { %v565_v0 = vmul.f32 %v1177_v55, %v1163_v46  ;;  %v546_v33 = vor.u32 1.1754944e-38, %v545_v17  ;;  %vm570_vm14 = vweird.f32 %v1177_v55  ;;  %v603_v53 = vand.u32 2147483647, %v1173_v51 }
 0x25c   :  { %v581_v6 = vsub.f32 1.0, %v580_v60  ;;  %vm544_vm0 = vcmp.eq.f32.partialorder %v543_v20, 8.507059e+37  ;;  %v633_v16 = vand.u32 2147483647, %v1180_v56 }
 0x25d   :  { %v378_v50 = vpop.f32.mrf.mxu3  ;;  %v566_v9 = vsub.f32 1.0, %v565_v0 }
 0x25e   :  { %v885_v52 = vmul.f32 -1.442695, %v378_v50  ;;  %v582_v18 = vmul.f32 %v1175_v54, %v581_v6 }
 0x25f   :  { %v937_v57 = vpop.eup %936  ;;  %v567_v22 = vmul.f32 %v1177_v55, %v566_v9 }
 0x260   :  { %940 = vpow2.f32 %v885_v52  ;;  %v1182_v58 = vpop.eup %938  ;;  %v535_v59 = vmul.f32 %v937_v57, %v1168_v49  ;;  %vm540_vm6 = vweird.f32 %v937_v57  ;;  %v583_v35 = vadd.f32 %v1175_v54, %v582_v18 }
 0x261   :  { %942 = vrcp.f32 %v1173_v51  ;;  %v520_v2 = vmul.f32 %v1182_v58, %v1165_v47  ;;  %vm1217_vm10 = vmor %vm539_vm8, %vm540_vm6  ;;  %v568_v38 = vadd.f32 %v1177_v55, %v567_v22  ;;  %vm525_vm1 = vweird.f32 %v1182_v58 }
 0x262   :  { %944 = vrcp.f32 %v1180_v56  ;;  %v536_v1 = vsub.f32 1.0, %v535_v59  ;;  %vm1251_vm6 = vmor %vm584_vm5, %vm585_vm11  ;;  %vm599_vm8 = vweird.f32 %v1173_v51 }
 0x263   :  { %v521_v11 = vsub.f32 1.0, %v520_v2  ;;  %v587_v52 = vsel %vm1251_vm6, %v1175_v54, %v583_v35  ;;  %vm1277_vm5 = vmor %vm524_vm9, %vm525_vm1  ;;  %vm1293_vm1 = vcmp.eq.f32.partialorder %v603_v53, 8.507059e+37 }
 0x264   :  { %v537_v5 = vmul.f32 %v937_v57, %v536_v1  ;;  %v592_v6 = vsel %vm1233_vm13, %v1199_v8, %v587_v52  ;;  %vm629_vm13 = vweird.f32 %v1180_v56 }
 0x265   :  { %v380_v61 = vpop.f32.mrf.mxu3  ;;  %v522_v27 = vmul.f32 %v1182_v58, %v521_v11  ;;  %v668_v18 = vsub.f32 1.0, %v592_v6 }
 0x266   :  { %v941_v62 = vpop.eup %940  ;;  %v538_v13 = vadd.f32 %v937_v57, %v537_v5 }
 0x267   :  { %v1193_v3 = vadd.f32 1.0, %v941_v62  ;;  %v1195_v4 = vpop.eup %942  ;;  %v523_v41 = vadd.f32 %v1182_v58, %v522_v27 }
 0x268   :  { %v595_v12 = vmul.f32 %v1195_v4, %v1173_v51  ;;  %v1205_v14 = vpop.eup %944  ;;  %v542_v30 = vsel %vm1217_vm10, %v937_v57, %v538_v13  ;;  %v605_v57 = vand.u32 2147483648, %v1173_v51  ;;  %v635_v51 = vand.u32 2147483648, %v1180_v56 }
 0x269   :  { %946 = vrcp.f32 %v1193_v3  ;;  %v625_v29 = vmul.f32 %v1205_v14, %v1180_v56  ;;  %v547_v39 = vsel %vm544_vm0, %v546_v33, %v542_v30  ;;  %v560_v45 = vand.u32 2147483648, %v1193_v3  ;;  %vm1264_vm0 = vmor %vm569_vm7, %vm570_vm14 }
 0x26a   :  { %v596_v28 = vsub.f32 1.0, %v595_v12  ;;  %v558_v50 = vand.u32 2147483647, %v1193_v3  ;;  %v665_v59 = vsub.f32 1.0, %v547_v39  ;;  %v572_v61 = vsel %vm1264_vm0, %v1177_v55, %v568_v38 }
 0x26b   :  { %v626_v43 = vsub.f32 1.0, %v625_v29  ;;  %vm600_vm7 = vweird.f32 %v1195_v4  ;;  %vm554_vm11 = vweird.f32 %v1193_v3  ;;  %v527_v63 = vsel %vm1277_vm5, %v1182_v58, %v523_v41 }
 0x26c   :  { %v597_v42 = vmul.f32 %v1195_v4, %v596_v28  ;;  %v561_v47 = vor.u32 1.1754944e-38, %v560_v45  ;;  %vm559_vm9 = vcmp.eq.f32.partialorder %v558_v50, 8.507059e+37  ;;  %v532_v7 = vsel %vm1238_vm15, %v531_v32, %v527_v63  ;;  %vm1306_vm6 = vmor %vm599_vm8, %vm600_vm7 }
 0x26d   :  { %v462_v21 = vpop.f32.mrf.mxu3  ;;  %v627_v0 = vmul.f32 %v1205_v14, %v626_v43  ;;  %v606_v13 = vor.u32 1.1754944e-38, %v605_v57  ;;  %v664_v15 = vsub.f32 1.0, %v532_v7  ;;  %vm634_vm8 = vcmp.eq.f32.partialorder %v633_v16, 8.507059e+37 }
 0x26e   :  { %v889_v25 = vmul.f32 -1.442695, %v462_v21  ;;  %v598_v55 = vadd.f32 %v1195_v4, %v597_v42 }
 0x26f   :  { %v947_v26 = vpop.eup %946  ;;  %v628_v12 = vadd.f32 %v1205_v14, %v627_v0 }
 0x270   :  { %v550_v34 = vmul.f32 %v947_v26, %v1193_v3  ;;  %948 = vpow2.f32 %v889_v25  ;;  %vm555_vm10 = vweird.f32 %v947_v26  ;;  %v577_v3 = vsel %vm1227_vm12, %v576_v23, %v572_v61 }
 0x271   :  { %vm556_vm14 = vmor %vm554_vm11, %vm555_vm10  ;;  %950 = vlog2.f32 %v547_v39  ;;  %v602_v11 = vsel %vm1306_vm6, %v1195_v4, %v598_v55  ;;  %vm630_vm12 = vweird.f32 %v1205_v14  ;;  %v667_v8 = vsub.f32 1.0, %v577_v3 }
 0x272   :  { %v551_v40 = vsub.f32 1.0, %v550_v34  ;;  %952 = vlog2.f32 %v665_v59  ;;  %v607_v4 = vsel %vm1293_vm1, %v606_v13, %v602_v11  ;;  %vm1321_vm15 = vmor %vm629_vm13, %vm630_vm12  ;;  %v636_v23 = vor.u32 1.1754944e-38, %v635_v51 }
 0x273   :  { %v632_v21 = vsel %vm1321_vm15, %v1205_v14, %v628_v12  ;;  %v669_v24 = vsub.f32 1.0, %v607_v4  ;;  %vm711_vm11 = vcmask 1044484  }
 0x274   :  { %v552_v49 = vmul.f32 %v947_v26, %v551_v40  ;;  %v637_v28 = vsel %vm634_vm8, %v636_v23, %v632_v21 }
 0x275   :  { %v464_v60 = vpop.f32.mrf.mxu3  ;;  %v671_v36 = vsub.f32 1.0, %v637_v28 }
 0x276   :  { %v553_v54 = vadd.f32 %v947_v26, %v552_v49  ;;  %v949_v62 = vpop.eup %948 }
 0x277   :  { %v1289_v2 = vadd.f32 1.0, %v949_v62  ;;  %v951_v17 = vpop.eup %950 }
 0x278   :  { %v557_v1 = vsel %vm556_vm14, %v947_v26, %v553_v54  ;;  %v953_v20 = vpop.eup %952  ;;  %v643_v26 = vmul.f32 0.6931472, %v951_v17  ;;  %vm720_vm14 = vcmask 1047559  }
 0x279   :  { %v562_v58 = vsel %vm559_vm9, %v561_v47, %v557_v1  ;;  %v675_v32 = vmul.f32 0.6931472, %v953_v20  ;;  %v620_v35 = vand.u32 2147483648, %v1289_v2  ;;  %v618_v40 = vand.u32 2147483647, %v1289_v2 }
 0x27a   :  { %954 = vlog2.f32 %v562_v58  ;;  %v666_v10 = vsub.f32 1.0, %v562_v58  ;;  %v657_v38 = vmax.f32 %v643_v26, -100.0  ;;  %vm614_vm0 = vweird.f32 %v1289_v2 }
 0x27b   :  { %956 = vrcp.f32 %v1289_v2  ;;  %v689_v50 = vmax.f32 %v675_v32, -100.0  ;;  %v621_v53 = vor.u32 1.1754944e-38, %v620_v35  ;;  %vm619_vm7 = vcmp.eq.f32.partialorder %v618_v40, 8.507059e+37 }
 0x27c   :  { %958 = vlog2.f32 %v666_v10  ;;  %v704_v61 = vrot.slane %v657_v38, 7  ;;  %vm758_vm9 = vcmask 31744  }
 0x27d   :  { %960 = vlog2.f32 %v592_v6  ;;  %v733_v1 = vrot.slane %v689_v50, 7 }
 0x27e   :  { %962 = vlog2.f32 %v577_v3 }
 0x27f   :  { %964 = vlog2.f32 %v532_v7 }
 0x280   :  { %v955_v22 = vpop.eup %954  ;;  %966 = vlog2.f32 %v667_v8 }
 0x281   :  { %v957_v56 = vpop.eup %956  ;;  %968 = vlog2.f32 %v664_v15  ;;  %v645_v30 = vmul.f32 0.6931472, %v955_v22 }
 0x282   :  { %v959_v25 = vpop.eup %958  ;;  %970 = vlog2.f32 %v668_v18  ;;  %v610_v27 = vmul.f32 %v957_v56, %v1289_v2  ;;  %vm615_vm10 = vweird.f32 %v957_v56 }
 0x283   :  { %v961_v29 = vpop.eup %960  ;;  %972 = vlog2.f32 %v607_v4  ;;  %v677_v34 = vmul.f32 0.6931472, %v959_v25  ;;  %v658_v42 = vmax.f32 %v645_v30, -100.0  ;;  %vm616_vm5 = vmor %vm614_vm0, %vm615_vm10 }
 0x284   :  { %v963_v31 = vpop.eup %962  ;;  %v611_v33 = vsub.f32 1.0, %v610_v27  ;;  %974 = vlog2.f32 %v669_v24  ;;  %v649_v45 = vmul.f32 0.6931472, %v961_v29 }
 0x285   :  { %v965_v14 = vpop.eup %964  ;;  %v647_v43 = vmul.f32 0.6931472, %v963_v31  ;;  %976 = vlog2.f32 %v637_v28  ;;  %v690_v44 = vmax.f32 %v677_v34, -100.0  ;;  %v706_v62 = vrot.slane %v658_v42, 6  ;;  %v639_v31 = vld [vmem:[%s1356_s8] sm:$0xff] }
 0x286   :  { %v967_v37 = vpop.eup %966  ;;  %v612_v39 = vmul.f32 %v957_v56, %v611_v33  ;;  %v641_v49 = vmul.f32 0.6931472, %v965_v14  ;;  %978 = vlog2.f32 %v671_v36  ;;  %v660_v11 = vmax.f32 %v649_v45, -100.0 }
 0x287   :  { %v969_v41 = vpop.eup %968  ;;  %v679_v57 = vmul.f32 0.6931472, %v967_v37  ;;  %v659_v55 = vmax.f32 %v647_v43, -100.0  ;;  %v735_v58 = vrot.slane %v690_v44, 6 }
 0x288   :  { %v971_v48 = vpop.eup %970  ;;  %v613_v52 = vadd.f32 %v957_v56, %v612_v39  ;;  %v673_v60 = vmul.f32 0.6931472, %v969_v41  ;;  %v656_v47 = vmax.f32 %v641_v49, -100.0  ;;  %v710_v23 = vrot.slane %v660_v11, 4 }
 0x289   :  { %v973_v59 = vpop.eup %972  ;;  %v681_v0 = vmul.f32 0.6931472, %v971_v48  ;;  %v691_v5 = vmax.f32 %v679_v57, -100.0  ;;  %v708_v15 = vrot.slane %v659_v55, 5  ;;  %v752_v39 = vlaneseq }
 0x28a   :  { %v617_v46 = vsel %vm616_vm5, %v957_v56, %v613_v52  ;;  %v975_v54 = vpop.eup %974  ;;  %v688_v6 = vmax.f32 %v673_v60, -100.0  ;;  %v651_v7 = vmul.f32 0.6931472, %v973_v59  ;;  %v705_v9 = vsel %vm298_vm3, %v704_v61, %v656_v47 }
 0x28b   :  { %v622_v63 = vsel %vm619_vm7, %v621_v53, %v617_v46  ;;  %v977_v2 = vpop.eup %976  ;;  %v692_v12 = vmax.f32 %v681_v0, -100.0  ;;  %v707_v8 = vsel %vm302_vm2, %v706_v62, %v705_v9  ;;  %v683_v51 = vmul.f32 0.6931472, %v975_v54 }
 0x28c   :  { %980 = vlog2.f32 %v622_v63  ;;  %v670_v3 = vsub.f32 1.0, %v622_v63  ;;  %v979_v10 = vpop.eup %978  ;;  %v655_v13 = vmul.f32 0.6931472, %v977_v2  ;;  %v734_v16 = vsel %vm298_vm3, %v733_v1, %v688_v6 }
 0x28d   :  { %v736_v17 = vsel %vm302_vm2, %v735_v58, %v734_v16  ;;  %v737_v18 = vrot.slane %v691_v5, 5  ;;  %v661_v19 = vmax.f32 %v651_v7, -100.0  ;;  %v687_v20 = vmul.f32 0.6931472, %v979_v10 }
 0x28e   :  { %982 = vlog2.f32 %v670_v3  ;;  %v709_v21 = vsel %vm306_vm4, %v708_v15, %v707_v8  ;;  %v663_v24 = vmax.f32 %v655_v13, -100.0  ;;  %v693_v25 = vmax.f32 %v683_v51, -100.0 }
 0x28f   :  { %v738_v26 = vsel %vm306_vm4, %v737_v18, %v736_v17  ;;  %v739_v27 = vrot.slane %v692_v12, 4  ;;  %v712_v30 = vsel %vm711_vm11, %v710_v23, %v709_v21  ;;  %vm714_vm2 = vcmask 1045509  }
 0x290   :  { %v695_v32 = vmax.f32 %v687_v20, -100.0  ;;  %v713_v33 = vrot.slane %v661_v19, 3  ;;  %vm717_vm3 = vcmask 1046534   ;;  %v719_v37 = vrot.slane %v663_v24, 1 }
 0x291   :  { %v740_v35 = vsel %vm711_vm11, %v739_v27, %v738_v26  ;;  %v741_v38 = vrot.slane %v693_v25, 3  ;;  %v724_v41 = vsub.f32 1.0, %v639_v31  ;;  %v753_v52 = vshrl.u32 %v752_v39, 7 }
 0x292   :  { %v981_v4 = vpop.eup %980  ;;  %v715_v36 = vsel %vm714_vm2, %v713_v33, %v712_v30  ;;  %v745_v48 = vrot.slane %v695_v32, 1 }
 0x293   :  { %v653_v22 = vmul.f32 0.6931472, %v981_v4  ;;  %v742_v45 = vsel %vm714_vm2, %v741_v38, %v740_v35  ;;  %vm756_vm4 = vcmp.lt.s32.totalorder %v753_v52, 2 }
 0x294   :  { %v983_v56 = vpop.eup %982 }
 0x295   :  { %v662_v28 = vmax.f32 %v653_v22, -100.0  ;;  %v685_v29 = vmul.f32 0.6931472, %v983_v56 }
 0x297   :  { %v694_v14 = vmax.f32 %v685_v29, -100.0  ;;  %v716_v34 = vrot.slane %v662_v28, 2 }
 0x299   :  { %v718_v40 = vsel %vm717_vm3, %v716_v34, %v715_v36  ;;  %v743_v42 = vrot.slane %v694_v14, 2 }
 0x29a   :  { %v721_v43 = vsel %vm720_vm14, %v719_v37, %v718_v40 }
 0x29b   :  { %v744_v49 = vsel %vm717_vm3, %v743_v42, %v742_v45  ;;  %v723_v44 = vmul.f32 %v721_v43, %v639_v31 }
 0x29c   :  { %v746_v50 = vsel %vm720_vm14, %v745_v48, %v744_v49 }
 0x29d   :  { %v748_v53 = vmul.f32 %v746_v50, %v724_v41 }
 0x29f   :  { %v749_v57 = vadd.f32 %v748_v53, %v723_v44 }
 0x2a1   :  { %v750_v59 = vsub.f32 0.0, %v749_v57 }
 0x2a3   :  { %v757_v60 = vsel %vm756_vm4, %v750_v59, 0.0 }
 0x2a4   :  { %v759_v61 = vsel %vm758_vm9, %v757_v60, 0.0 }
 0x2a5   :  { %760 = vadd.xlane.f32.xlu0 %v759_v61 }
 0x318   :  { %v761_v46 = vpop.xlane.xlu0 %760 }
 0x319   :  { %v762_v54 = vrot.slane %v761_v46, 4 }
 0x31b   :  { %v763_v62 = vadd.f32 %v762_v54, %v761_v46 }
 0x31d   :  { %v764_v63 = vrot.slane %v763_v62, 2 }
 0x31f   :  { %v765_v55 = vadd.f32 %v764_v63, %v763_v62 }
 0x321   :  { %v766_v0 = vrot.slane %v765_v55, 1 }
 0x323   :  { %v767_v47 = vadd.f32 %v766_v0, %v765_v55 }
 0x325   :  { %915 = vpush %v767_v47 }
 0x356   :  { %s916_s8 = spop %915 }
 0x357   :  { %v769_v1 = vstv %s916_s8 }
 0x358   :  { %770 = vst [vmem:[%s1357_s9] sm:$0xff] %v769_v1 }

</bundles_post_ra>
